<compile_context>
chip_gen: v6e
topology: v6e:2x2x1
jax: 0.10.0
libtpu: 0.0.40
codegen_flags: <defaults>
</compile_context>

<pallas_src>
import jax
import jax.numpy as jnp
from jax.experimental import pallas as pl
from jax.experimental.pallas import tpu as pltpu


_LANE = 512          # lane-dense last dim (multiple of 128)
_BLOCK_ROWS = 1024   # 1024 x 512 f32 = 2 MiB per block buffer


# ----------------------------------------------------------------------------
# Pallas kernel factory: per-effect gain + clip, scales baked in as constants
# ----------------------------------------------------------------------------
def _make_effect_kernel(scales):
    scales = tuple(float(s) for s in scales)

    def kernel(x_ref, o_ref):
        # x_ref: (block_rows, _LANE) input dtype; o_ref: same shape, f32.
        y = x_ref[...].astype(jnp.float32)
        for s in scales:  # unrolled at trace time; VPU work is free under HBM bound
            y = jnp.clip(y * s, -1.0, 1.0)  # sox clips after each effect
        o_ref[...] = y

    return kernel


# ----------------------------------------------------------------------------
# Wrapper: flatten -> lane-dense slab -> tiled elementwise kernel -> reshape back
# ----------------------------------------------------------------------------
def _apply_effects_pallas(wave: jax.Array, scales) -> jax.Array:
    orig_shape = wave.shape
    flat = wave.reshape(-1)
    n = flat.shape[0]

    # Pad so the slab has a whole number of (8, 512) tiles (<= 16 KiB of padding).
    pad_to = 8 * _LANE
    padded = pl.cdiv(n, pad_to) * pad_to
    if padded != n:
        flat = jnp.pad(flat, (0, padded - n))

    rows = padded // _LANE
    x2d = flat.reshape(rows, _LANE)

    block_rows = min(_BLOCK_ROWS, rows)  # rows is always a multiple of 8
    grid = (pl.cdiv(rows, block_rows),)

    out2d = pl.pallas_call(
        _make_effect_kernel(scales),
        out_shape=jax.ShapeDtypeStruct((rows, _LANE), jnp.float32),
        grid=grid,
        in_specs=[pl.BlockSpec((block_rows, _LANE), lambda r: (r, 0))],
        out_specs=pl.BlockSpec((block_rows, _LANE), lambda r: (r, 0)),
        compiler_params=pltpu.CompilerParams(
            dimension_semantics=("parallel",),  # lets v7x split rows across its 2 TCs
        ),
    )(x2d)

    return out2d.reshape(-1)[:n].reshape(orig_shape)


# ----------------------------------------------------------------------------
# Module-equivalent wrapper
# ----------------------------------------------------------------------------
class SoxEffectPallas:
    """Pallas equivalent of SoxEffect for amplitude-style sox effects.

    Args:
        effects: list of sox effect argv lists, e.g. [["gain", "-3"], ["vol", "0.5"]].
        sr: sample rate (unused for amplitude effects, kept for interface parity).
    """

    _SUPPORTED = ("gain", "vol", "negate")

    def __init__(self, effects: list[list[str]], sr: int = 16000) -> None:
        self.effects = effects
        self.sr = sr
        # One linear scale per effect; applied sequentially with clipping after each,
        # matching sox's per-effect clipping behaviour.
        scales = []
        for eff in effects:
            name = eff[0]
            if name == "gain":
                flags = [a for a in eff[1:] if not _is_number(a)]
                if flags:
                    # TODO(synk): gain flags like -n (normalize) / -l / -e change
                    # semantics (need a data-dependent peak scan) and are not supported.
                    raise NotImplementedError(f"sox 'gain' flags {flags} not supported")
                db = next((float(a) for a in eff[1:] if _is_number(a)), 0.0)
                scales.append(10.0 ** (db / 20.0))
            elif name == "vol":
                factor = next((float(a) for a in eff[1:] if _is_number(a)), 1.0)
                scales.append(factor)
            elif name == "negate":
                scales.append(-1.0)
            else:
                # TODO(synk): unsupported sox effect (resampling / IIR) -- no clean
                # elementwise Pallas equivalent.
                raise NotImplementedError(f"sox effect '{name}' not supported in Pallas port")
        self._scales = tuple(float(s) for s in scales)

    def __call__(self, wave: jax.Array) -> jax.Array:
        # Do NOT pre-cast to f32 here: the kernel casts internally, keeping narrow
        # input dtypes (bf16/f16) cheap on the HBM read path.  Output is float32,
        # matching torchaudio's sox float tensor output.
        return _apply_effects_pallas(wave, self._scales)


def _is_number(s: str) -> bool:
    try:
        float(s)
        return True
    except ValueError:
        return False


def _reference(wave: jax.Array, scales) -> jax.Array:
    ref = wave.astype(jnp.float32)
    for s in scales:
        ref = jnp.clip(ref * s, -1.0, 1.0)
    return ref


# ----------------------------------------------------------------------------
# Demo / smoke test
# ----------------------------------------------------------------------------
if __name__ == "__main__":
    key = jax.random.PRNGKey(0)
    k1, k2 = jax.random.split(key)

    effects = [["gain", "3"], ["vol", "0.8"], ["negate"]]
    module = SoxEffectPallas(effects, sr=16000)

    # Test 1: small (channels, frames) clip -> single-block grid path.
    C, T = 2, 2048
    wave = jax.random.uniform(k1, (C, T), dtype=jnp.float32, minval=-0.9, maxval=0.9)
    out = jax.block_until_ready(module(wave))
    ref = _reference(wave, module._scales)
    assert out.shape == wave.shape and out.dtype == jnp.float32
    assert float(jnp.max(jnp.abs(out - ref))) < 1e-6

    # Test 2: non-tile-multiple length -> padding path + partial edge block.
    C2, T2 = 2, 9001
    wave2 = jax.random.uniform(k2, (C2, T2), dtype=jnp.float32, minval=-0.9, maxval=0.9)
    out2 = jax.block_until_ready(module(wave2))
    ref2 = _reference(wave2, module._scales)
    assert out2.shape == wave2.shape and out2.dtype == jnp.float32
    assert float(jnp.max(jnp.abs(out2 - ref2))) < 1e-6

    print("KERNEL_OK")
</pallas_src>

<mosaic_0001>
module attributes {stable_mosaic.version = 11 : i64} {
  func.func @kernel(%arg0: i32, %arg1: memref<8x512xf32, #tpu.memory_space<vmem>>, %arg2: memref<8x512xf32, #tpu.memory_space<vmem>>) attributes {dimension_semantics = [#tpu.dimension_semantics<parallel>], iteration_bounds = array<i64: 1>, scalar_prefetch = 0 : i64, scratch_operands = 0 : i64, tpu.core_type = #tpu.core_type<tc>, window_params = [{transform_indices = @transform_0, window_bounds = array<i64: 8, 512>}, {transform_indices = @transform_1, window_bounds = array<i64: 8, 512>}]} {
    %c0 = arith.constant 0 : index
    %c0_0 = arith.constant 0 : index
    %0 = vector.load %arg1[%c0, %c0_0] : memref<8x512xf32, #tpu.memory_space<vmem>>, vector<8x512xf32>
    %cst = arith.constant 1.41253757 : f32
    %1 = vector.broadcast %cst : f32 to vector<8x512xf32>
    %2 = arith.mulf %0, %1 : vector<8x512xf32>
    %cst_1 = arith.constant -1.000000e+00 : f32
    %cst_2 = arith.constant 1.000000e+00 : f32
    %3 = vector.broadcast %cst_1 : f32 to vector<8x512xf32>
    %4 = arith.maximumf %3, %2 : vector<8x512xf32>
    %5 = vector.broadcast %cst_2 : f32 to vector<8x512xf32>
    %6 = arith.minimumf %5, %4 : vector<8x512xf32>
    %cst_3 = arith.constant 8.000000e-01 : f32
    %7 = vector.broadcast %cst_3 : f32 to vector<8x512xf32>
    %8 = arith.mulf %6, %7 : vector<8x512xf32>
    %cst_4 = arith.constant -1.000000e+00 : f32
    %cst_5 = arith.constant 1.000000e+00 : f32
    %9 = vector.broadcast %cst_4 : f32 to vector<8x512xf32>
    %10 = arith.maximumf %9, %8 : vector<8x512xf32>
    %11 = vector.broadcast %cst_5 : f32 to vector<8x512xf32>
    %12 = arith.minimumf %11, %10 : vector<8x512xf32>
    %cst_6 = arith.constant -1.000000e+00 : f32
    %13 = vector.broadcast %cst_6 : f32 to vector<8x512xf32>
    %14 = arith.mulf %12, %13 : vector<8x512xf32>
    %cst_7 = arith.constant -1.000000e+00 : f32
    %cst_8 = arith.constant 1.000000e+00 : f32
    %15 = vector.broadcast %cst_7 : f32 to vector<8x512xf32>
    %16 = arith.maximumf %15, %14 : vector<8x512xf32>
    %17 = vector.broadcast %cst_8 : f32 to vector<8x512xf32>
    %18 = arith.minimumf %17, %16 : vector<8x512xf32>
    %c0_9 = arith.constant 0 : index
    %c0_10 = arith.constant 0 : index
    %19 = vector.load %arg2[%c0_9, %c0_10] : memref<8x512xf32, #tpu.memory_space<vmem>>, vector<8x512xf32>
    tpu.vector_store %arg2[%c0_9, %c0_10], %18 {strides = array<i32>} : memref<8x512xf32, #tpu.memory_space<vmem>>, vector<8x512xf32>,
    return
  }
  func.func @transform_0(%arg0: i32) -> (i32, i32) {
    %c0_i32 = arith.constant 0 : i32
    %c0_i32_0 = arith.constant 0 : i32
    return %arg0, %c0_i32 : i32, i32
  }
  func.func @transform_1(%arg0: i32) -> (i32, i32) {
    %c0_i32 = arith.constant 0 : i32
    %c0_i32_0 = arith.constant 0 : i32
    return %arg0, %c0_i32 : i32, i32
  }
}

</mosaic_0001>

<bundles_post_ra>
// kernel: tpu_custom_call.1
= control target key start
LH: loop header
LB: loop body
LE: loop exit
PB: predicated region body
PF: predicated region fallthrough
CT: control target
= control target key end

     0   :  { %6 = vsyncpa [#allocation3], 0  ;;  %s156_s0 = inlined_call_operand.hbm [shape: f32[8,512], index: 0, kind: input, shape index: {}]   ;;  %s157_s1 = inlined_call_operand.hbm [shape: f32[8,512], index: 1, kind: output, shape index: {}]  }
   0x1   :  { %7 = vsyncpa [#allocation4], 0  ;;  %s138_s6 = smov [#allocation2]  }
   0x2   :  { %s14_s7 = sshll.u32 %s138_s6, 4  ;;  %s15_s7 = int_to_ptr.vmem [resolvable:$true] %s14_s7 }
   0x3   :  { %s102_s8 = scalar_lea.vmem %s15_s7, 512  ;;  %p107_p1 = scmp.lt.s32.totalorder %s15_s7, %s15_s7 }
   0x4   :  { %p103_p0 = scmp.ne.s32.totalorder %s15_s7, %s102_s8  ;;  %p108_p2 = scmp.lt.s32.totalorder %s102_s8, %s102_s8 }
   0x6   :  { %p109_p3 = por %p108_p2, %p107_p1 }
   0x8   :  { %p110_p4 = pnand %p109_p3, %p103_p0 }
   0xa   :  { %113 = shalt.err (!%p110_p4)
}
   0xb   :  { %17 = dma.hbm_to_vmem [thread:$0]  %s156_s0, 512, %s15_s7, [#allocation3]  }
   0xc   :  { %134 = dma.done.wait [#allocation3], 512  }
   0xd   :  { %135 = vsyncadd [#allocation3], 4294966784  ;;  %v21_v0 = vld [vmem:[#allocation2] sm:$0xff]  ;;  %v22_v1 = vld [vmem:[#allocation2 + $0x8] sm:$0xff]  ;;  %s139_s0 = smov [#allocation5]  }
   0xe   :  { %v23_v2 = vld [vmem:[#allocation2 + $0x10] sm:$0xff]  ;;  %v25_v3 = vmul.f32 1.4125376, %v21_v0  ;;  %v26_v4 = vmul.f32 1.4125376, %v22_v1  ;;  %v24_v6 = vld [vmem:[#allocation2 + $0x18] sm:$0xff] }
   0xf   :  { %v27_v5 = vmul.f32 1.4125376, %v23_v2  ;;  %v28_v10 = vmul.f32 1.4125376, %v24_v6  ;;  %s71_s11 = sshll.u32 %s139_s0, 4  ;;  %s72_s11 = int_to_ptr.vmem [resolvable:$true] %s71_s11 }
  0x10   :  { %v80_v7 = vclamps-f32 %v25_v3, 1.0  ;;  %v81_v8 = vclamps-f32 %v26_v4, 1.0  ;;  %s114_s12 = scalar_lea.vmem %s72_s11, 512  ;;  %p119_p6 = scmp.lt.s32.totalorder %s72_s11, %s72_s11 }
  0x11   :  { %v82_v9 = vclamps-f32 %v27_v5, 1.0  ;;  %v83_v14 = vclamps-f32 %v28_v10, 1.0  ;;  %p115_p5 = scmp.ne.s32.totalorder %s72_s11, %s114_s12  ;;  %p120_p7 = scmp.lt.s32.totalorder %s114_s12, %s114_s12 }
  0x12   :  { %v37_v11 = vmul.f32 0.8, %v80_v7  ;;  %v38_v12 = vmul.f32 0.8, %v81_v8 }
  0x13   :  { %v39_v13 = vmul.f32 0.8, %v82_v9  ;;  %v40_v18 = vmul.f32 0.8, %v83_v14  ;;  %p121_p8 = por %p120_p7, %p119_p6 }
  0x14   :  { %v84_v15 = vclamps-f32 %v37_v11, 1.0  ;;  %v85_v16 = vclamps-f32 %v38_v12, 1.0 }
  0x15   :  { %v86_v17 = vclamps-f32 %v39_v13, 1.0  ;;  %v87_v22 = vclamps-f32 %v40_v18, 1.0  ;;  %p122_p9 = pnand %p121_p8, %p115_p5 }
  0x16   :  { %v49_v19 = vmul.f32 -1.0, %v84_v15  ;;  %v50_v20 = vmul.f32 -1.0, %v85_v16 }
  0x17   :  { %v51_v21 = vmul.f32 -1.0, %v86_v17  ;;  %v52_v26 = vmul.f32 -1.0, %v87_v22 }
  0x18   :  { %v88_v23 = vclamps-f32 %v49_v19, 1.0  ;;  %v89_v24 = vclamps-f32 %v50_v20, 1.0 }
  0x19   :  { %v90_v25 = vclamps-f32 %v51_v21, 1.0  ;;  %v91_v27 = vclamps-f32 %v52_v26, 1.0 }
  0x1a   :  { %61 = vst [vmem:[#allocation5] sm:$0xff] %v88_v23  ;;  %62 = vst [vmem:[#allocation5 + $0x8] sm:$0xff] %v89_v24 }
  0x1b   :  { %63 = vst [vmem:[#allocation5 + $0x10] sm:$0xff] %v90_v25  ;;  %64 = vst [vmem:[#allocation5 + $0x18] sm:$0xff] %v91_v27 }
  0x1c   :  { %125 = shalt.err (!%p122_p9)
}
  0x1d   :  { %74 = dma.vmem_to_hbm [thread:$0]  %s72_s11, 512, %s157_s1, [#allocation4]  }
  0x1e   :  { %136 = dma.done.wait [#allocation4], 512  }
  0x1f   :  { %137 = vsyncadd [#allocation4], 4294966784 }
  0x20   :  { %78 = vsyncpa [#allocation3], 1 }
  0x21   :  { %79 = vsyncpa [#allocation4], 1 }

</bundles_post_ra>
